<compile_context>
chip_gen: v7x
topology: tpu7x:2x2x1
jax: 0.10.0
libtpu: 0.0.40
codegen_flags: <defaults>
</compile_context>

<pallas_src>
import math
import functools

import jax
import jax.numpy as jnp
from jax import lax
from jax.experimental import pallas as pl
from jax.experimental.pallas import tpu as pltpu

NEG_BIG = -1e9      # additive causal-mask value (stands in for -inf, NaN-safe)
PAD_BIAS = -1e30    # bias on padded vocab columns -> exp() underflows to 0


# ----------------------------- kernel ----------------------------------------


def _layer_norm(x, w, b, eps=1e-5):
    mu = jnp.mean(x, axis=-1, keepdims=True)
    var = jnp.mean((x - mu) ** 2, axis=-1, keepdims=True)
    return (x - mu) * lax.rsqrt(var + eps) * w + b


def transformer_kernel(x_ref, pe_ref,
                       wqkv_ref, bqkv_ref, wo_ref, bo_ref,
                       ln1w_ref, ln1b_ref,
                       w1_ref, b1_ref, w2_ref, b2_ref,
                       ln2w_ref, ln2b_ref,
                       decw_ref, decb_ref,
                       o_ref, xs_ref, *, nhead):
    """Grid = (batch_sample [parallel], layer [arbitrary]).

    Per step: apply encoder layer `l` to the carried activation of sample `b`
    (VMEM scratch xs_ref).  At l == 0 the scratch is initialized with the
    positional encoding; at the last layer the decoder + log_softmax run and
    the (S, Vp) output block is emitted.
    """
    layer = pl.program_id(1)
    bf16 = jnp.bfloat16

    @pl.when(layer == 0)
    def _():
        # Positional encoding.
        # TODO(synk): nn.Dropout layers are identity under eval semantics; no RNG.
        xs_ref[...] = x_ref[0] + pe_ref[...]

    x = xs_ref[...]                                 # (S, D) f32
    S, D = x.shape
    hd = D // nhead

    # ----------------------- self-attention (post-norm layer) -----------------
    qkv = jnp.dot(x.astype(bf16), wqkv_ref[0],
                  preferred_element_type=jnp.float32) + bqkv_ref[0]   # (S, 3D) f32

    # Causal mask built in-kernel (iota compare); nothing materialized in HBM.
    row = lax.broadcasted_iota(jnp.int32, (S, S), 0)
    col = lax.broadcasted_iota(jnp.int32, (S, S), 1)
    mask = jnp.where(col <= row, 0.0, NEG_BIG)

    wo = wo_ref[0]                                  # (D, D) bf16
    attn = jnp.zeros((S, D), jnp.float32)
    # TODO(synk): replace this small static head unroll with one (b,h)-batched
    # dot_general once multi-batch-dim dot lowering is available in Mosaic.
    for h in range(nhead):
        q_h = qkv[:, h * hd:(h + 1) * hd].astype(bf16)            # scale pre-folded
        k_h = qkv[:, D + h * hd:D + (h + 1) * hd].astype(bf16)
        v_h = qkv[:, 2 * D + h * hd:2 * D + (h + 1) * hd].astype(bf16)
        s = lax.dot_general(q_h, k_h, (((1,), (1,)), ((), ())),
                            preferred_element_type=jnp.float32)    # (S, S) = q @ k^T
        s = s + mask
        s = s - jnp.max(s, axis=-1, keepdims=True)
        p = jnp.exp(s)
        p = p * pl.reciprocal(jnp.sum(p, axis=-1, keepdims=True), approx=True)
        ctx = jnp.dot(p.astype(bf16), v_h,
                      preferred_element_type=jnp.float32)          # (S, hd)
        # Head-concat folded into the output projection (sublane slice of Wo).
        attn = attn + jnp.dot(ctx.astype(bf16), wo[h * hd:(h + 1) * hd, :],
                              preferred_element_type=jnp.float32)
    attn = attn + bo_ref[0]
    x = _layer_norm(x + attn, ln1w_ref[0], ln1b_ref[0])

    # ----------------------- feed-forward --------------------------------------
    h1 = jnp.dot(x.astype(bf16), w1_ref[0],
                 preferred_element_type=jnp.float32) + b1_ref[0]
    h1 = jnp.maximum(h1, 0.0)                       # ReLU
    ff = jnp.dot(h1.astype(bf16), w2_ref[0],
                 preferred_element_type=jnp.float32) + b2_ref[0]
    x = _layer_norm(x + ff, ln2w_ref[0], ln2b_ref[0])

    xs_ref[...] = x                                 # carry to the next layer step

    # ----------------- decoder + log_softmax (last layer step only) ------------
    @pl.when(layer == pl.num_programs(1) - 1)
    def _():
        # TODO(synk): for large vocab, tile over Vp with a streaming logsumexp
        # instead of materializing the full (S, Vp) logits block.
        logits = jnp.dot(x.astype(bf16), decw_ref[...],
                         preferred_element_type=jnp.float32) + decb_ref[...]
        z = logits - jnp.max(logits, axis=-1, keepdims=True)
        lse = jnp.log(jnp.sum(jnp.exp(z), axis=-1, keepdims=True))
        o_ref[0] = z - lse


# ----------------------------- wrapper (glue) ---------------------------------


def _make_pe(max_len, d_model):
    position = jnp.arange(max_len, dtype=jnp.float32)[:, None]
    div_term = jnp.exp(jnp.arange(0, d_model, 2, dtype=jnp.float32)
                       * (-math.log(10000.0) / d_model))
    pe = jnp.zeros((max_len, d_model), jnp.float32)
    pe = pe.at[:, 0::2].set(jnp.sin(position * div_term))
    pe = pe.at[:, 1::2].set(jnp.cos(position * div_term))
    return pe                                                       # (max_len, D)


def init_params(key, ntoken, ninp, nhead, nhid, nlayers):
    def u(k, shape, a):
        return jax.random.uniform(k, shape, jnp.float32, -a, a)

    ks = jax.random.split(key, 9)
    ba = 1.0 / math.sqrt(ninp)
    bf_ = 1.0 / math.sqrt(nhid)
    L = nlayers
    hd = ninp // nhead
    scale = 1.0 / math.sqrt(hd)

    # Weight matrices pre-transposed to (in_features, out_features), stacked
    # across layers on a leading axis so the kernel streams them per grid step.
    wqkv = u(ks[0], (L, ninp, 3 * ninp), ba)
    bqkv = jnp.zeros((L, 1, 3 * ninp), jnp.float32)
    # Fold the 1/sqrt(head_dim) attention scale into the Q projection.
    wqkv = wqkv.at[:, :, :ninp].multiply(scale)
    bqkv = bqkv.at[:, :, :ninp].multiply(scale)

    params = dict(
        wqkv=wqkv.astype(jnp.bfloat16),
        bqkv=bqkv,
        wo=u(ks[1], (L, ninp, ninp), ba).astype(jnp.bfloat16),
        bo=u(ks[2], (L, 1, ninp), ba),
        ln1w=jnp.ones((L, 1, ninp), jnp.float32),
        ln1b=jnp.zeros((L, 1, ninp), jnp.float32),
        w1=u(ks[3], (L, ninp, nhid), ba).astype(jnp.bfloat16),
        b1=u(ks[4], (L, 1, nhid), ba),
        w2=u(ks[5], (L, nhid, ninp), bf_).astype(jnp.bfloat16),
        b2=u(ks[6], (L, 1, ninp), bf_),
        ln2w=jnp.ones((L, 1, ninp), jnp.float32),
        ln2b=jnp.zeros((L, 1, ninp), jnp.float32),
    )
    # Decoder: pad vocab to a multiple of 128 so the kernel output is lane-dense;
    # padded columns get a huge negative bias so log_softmax is unaffected.
    vpad = int(pl.cdiv(ntoken, 128)) * 128
    dec_w = jnp.zeros((ninp, vpad), jnp.float32).at[:, :ntoken].set(
        u(ks[7], (ninp, ntoken), 0.1))                 # init_weights(): U(-0.1, 0.1)
    dec_b = jnp.full((1, vpad), PAD_BIAS, jnp.float32).at[:, :ntoken].set(
        u(ks[8], (1, ntoken), ba))                     # nn.Linear default bias init
    params.update(dec_w=dec_w.astype(jnp.bfloat16), dec_b=dec_b,
                  pe=_make_pe(5000, ninp))
    return params


def transformer_forward(params, src, *, nhead, ntoken):
    """src: [S, B, D] (seq-first, PyTorch convention) -> log-probs [S, B, ntoken]."""
    S, B, D = src.shape
    L = params['wqkv'].shape[0]
    nhid = params['w1'].shape[2]
    Vp = params['dec_w'].shape[1]
    pe = params['pe'][:S]

    # TODO(synk): at production sizes fold these layout transposes into the
    # surrounding graph (or move to batch-tiled seq-first blocks); here they
    # are negligible XLA glue around the fused kernel.
    x_bfirst = jnp.transpose(src, (1, 0, 2))       # (B, S, D)

    stream = lambda b, l: (l, 0, 0)                # per-layer streamed weights
    resident = lambda b, l: (0, 0)                 # layer-invariant operands

    kern = functools.partial(transformer_kernel, nhead=nhead)
    out = pl.pallas_call(
        kern,
        grid=(B, L),
        out_shape=jax.ShapeDtypeStruct((B, S, Vp), jnp.float32),
        in_specs=[
            pl.BlockSpec((1, S, D), lambda b, l: (b, 0, 0)),       # x (per sample)
            pl.BlockSpec((S, D), resident),                        # positional enc
            pl.BlockSpec((1, D, 3 * D), stream),                   # wqkv
            pl.BlockSpec((1, 1, 3 * D), stream),                   # bqkv
            pl.BlockSpec((1, D, D), stream),                       # wo
            pl.BlockSpec((1, 1, D), stream),                       # bo
            pl.BlockSpec((1, 1, D), stream),                       # ln1w
            pl.BlockSpec((1, 1, D), stream),                       # ln1b
            pl.BlockSpec((1, D, nhid), stream),                    # w1
            pl.BlockSpec((1, 1, nhid), stream),                    # b1
            pl.BlockSpec((1, nhid, D), stream),                    # w2
            pl.BlockSpec((1, 1, D), stream),                       # b2
            pl.BlockSpec((1, 1, D), stream),                       # ln2w
            pl.BlockSpec((1, 1, D), stream),                       # ln2b
            pl.BlockSpec((D, Vp), resident),                       # dec_w
            pl.BlockSpec((1, Vp), resident),                       # dec_b
        ],
        out_specs=pl.BlockSpec((1, S, Vp), lambda b, l: (b, 0, 0)),
        scratch_shapes=[pltpu.VMEM((S, D), jnp.float32)],          # carried activation
        compiler_params=pltpu.CompilerParams(
            dimension_semantics=("parallel", "arbitrary"),
            vmem_limit_bytes=32 * 1024 * 1024),
    )(x_bfirst, pe,
      params['wqkv'], params['bqkv'], params['wo'], params['bo'],
      params['ln1w'], params['ln1b'],
      params['w1'], params['b1'], params['w2'], params['b2'],
      params['ln2w'], params['ln2b'],
      params['dec_w'], params['dec_b'])

    out = out[:, :, :ntoken]                       # drop lane-padding columns
    return jnp.transpose(out, (1, 0, 2))           # back to [S, B, ntoken]


# ----------------------------- pure-JAX reference ------------------------------


def transformer_reference(params, src, *, nhead, ntoken):
    """Mirror of the kernel math (same bf16 cast points, exact softmax divide)."""
    S, B, D = src.shape
    hd = D // nhead
    bf16 = jnp.bfloat16
    x = jnp.transpose(src, (1, 0, 2)) + params['pe'][:S][None]      # (B, S, D)
    i = jnp.arange(S)
    mask = jnp.where(i[None, :] <= i[:, None], 0.0, NEG_BIG)
    L = params['wqkv'].shape[0]
    for l in range(L):
        qkv = jnp.einsum('bsd,de->bse', x.astype(bf16), params['wqkv'][l],
                         preferred_element_type=jnp.float32) + params['bqkv'][l]
        q = qkv[..., :D].reshape(B, S, nhead, hd)
        k = qkv[..., D:2 * D].reshape(B, S, nhead, hd)
        v = qkv[..., 2 * D:].reshape(B, S, nhead, hd)
        s = jnp.einsum('bqhd,bkhd->bhqk', q.astype(bf16), k.astype(bf16),
                       preferred_element_type=jnp.float32) + mask
        s = s - jnp.max(s, axis=-1, keepdims=True)
        p = jnp.exp(s)
        p = p / jnp.sum(p, axis=-1, keepdims=True)
        ctx = jnp.einsum('bhqk,bkhd->bqhd', p.astype(bf16), v.astype(bf16),
                         preferred_element_type=jnp.float32).reshape(B, S, D)
        attn = jnp.einsum('bsd,de->bse', ctx.astype(bf16), params['wo'][l],
                          preferred_element_type=jnp.float32) + params['bo'][l]
        x = _layer_norm(x + attn, params['ln1w'][l], params['ln1b'][l])
        h1 = jnp.maximum(
            jnp.einsum('bsd,de->bse', x.astype(bf16), params['w1'][l],
                       preferred_element_type=jnp.float32) + params['b1'][l], 0.0)
        ff = jnp.einsum('bsh,hd->bsd', h1.astype(bf16), params['w2'][l],
                        preferred_element_type=jnp.float32) + params['b2'][l]
        x = _layer_norm(x + ff, params['ln2w'][l], params['ln2b'][l])
    logits = jnp.einsum('bsd,dv->bsv', x.astype(bf16), params['dec_w'],
                        preferred_element_type=jnp.float32) + params['dec_b']
    out = jax.nn.log_softmax(logits, axis=-1)[:, :, :ntoken]
    return jnp.transpose(out, (1, 0, 2))            # [S, B, ntoken]


# ----------------------------- main -------------------------------------------

if __name__ == "__main__":
    S, B = 8, 2                        # seq_len, batch
    ntoken, ninp, nhead, nhid, nlayers = 12, 32, 4, 64, 2

    key = jax.random.PRNGKey(0)
    kx, kp = jax.random.split(key)
    src = jax.random.normal(kx, (S, B, ninp), jnp.float32)
    params = init_params(kp, ntoken, ninp, nhead, nhid, nlayers)

    fwd = jax.jit(functools.partial(transformer_forward, nhead=nhead, ntoken=ntoken))
    out = jax.block_until_ready(fwd(params, src))

    assert out.shape == (S, B, ntoken)
    # log_softmax rows must exponentiate-sum to 1
    assert bool(jnp.allclose(jnp.sum(jnp.exp(out), axis=-1), 1.0, atol=1e-4))
    assert bool(jnp.all(jnp.isfinite(out)))
    # Tolerance-based check vs a pure-JAX mirror (approx reciprocal + bf16 MXU).
    ref = transformer_reference(params, src, nhead=nhead, ntoken=ntoken)
    assert bool(jnp.allclose(out, ref, atol=5e-2, rtol=5e-2))
    print("KERNEL_OK")
</pallas_src>

<mosaic_0001>
module attributes {stable_mosaic.version = 11 : i64} {
  func.func @transformer_kernel(%arg0: i32, %arg1: i32, %arg2: memref<1x8x32xf32, #tpu.memory_space<vmem>>, %arg3: memref<8x32xf32, #tpu.memory_space<vmem>>, %arg4: memref<1x32x96xbf16, #tpu.memory_space<vmem>>, %arg5: memref<1x1x96xf32, #tpu.memory_space<vmem>>, %arg6: memref<1x32x32xbf16, #tpu.memory_space<vmem>>, %arg7: memref<1x1x32xf32, #tpu.memory_space<vmem>>, %arg8: memref<1x1x32xf32, #tpu.memory_space<vmem>>, %arg9: memref<1x1x32xf32, #tpu.memory_space<vmem>>, %arg10: memref<1x32x64xbf16, #tpu.memory_space<vmem>>, %arg11: memref<1x1x64xf32, #tpu.memory_space<vmem>>, %arg12: memref<1x64x32xbf16, #tpu.memory_space<vmem>>, %arg13: memref<1x1x32xf32, #tpu.memory_space<vmem>>, %arg14: memref<1x1x32xf32, #tpu.memory_space<vmem>>, %arg15: memref<1x1x32xf32, #tpu.memory_space<vmem>>, %arg16: memref<32x128xbf16, #tpu.memory_space<vmem>>, %arg17: memref<1x128xf32, #tpu.memory_space<vmem>>, %arg18: memref<1x8x128xf32, #tpu.memory_space<vmem>>, %arg19: memref<8x32xf32, #tpu.memory_space<vmem>>) attributes {dimension_semantics = [#tpu.dimension_semantics<parallel>, #tpu.dimension_semantics<arbitrary>], iteration_bounds = array<i64: 2, 2>, scalar_prefetch = 0 : i64, scratch_operands = 1 : i64, tpu.core_type = #tpu.core_type<tc>, window_params = [{transform_indices = @transform_0, window_bounds = array<i64: 1, 8, 32>}, {pipeline_mode = #tpu.pipeline_mode<synchronous>, transform_indices = @transform_1, window_bounds = array<i64: 8, 32>}, {transform_indices = @transform_2, window_bounds = array<i64: 1, 32, 96>}, {transform_indices = @transform_3, window_bounds = array<i64: 1, 1, 96>}, {transform_indices = @transform_4, window_bounds = array<i64: 1, 32, 32>}, {transform_indices = @transform_5, window_bounds = array<i64: 1, 1, 32>}, {transform_indices = @transform_6, window_bounds = array<i64: 1, 1, 32>}, {transform_indices = @transform_7, window_bounds = array<i64: 1, 1, 32>}, {transform_indices = @transform_8, window_bounds = array<i64: 1, 32, 64>}, {transform_indices = @transform_9, window_bounds = array<i64: 1, 1, 64>}, {transform_indices = @transform_10, window_bounds = array<i64: 1, 64, 32>}, {transform_indices = @transform_11, window_bounds = array<i64: 1, 1, 32>}, {transform_indices = @transform_12, window_bounds = array<i64: 1, 1, 32>}, {transform_indices = @transform_13, window_bounds = array<i64: 1, 1, 32>}, {pipeline_mode = #tpu.pipeline_mode<synchronous>, transform_indices = @transform_14, window_bounds = array<i64: 32, 128>}, {pipeline_mode = #tpu.pipeline_mode<synchronous>, transform_indices = @transform_15, window_bounds = array<i64: 1, 128>}, {transform_indices = @transform_16, window_bounds = array<i64: 1, 8, 128>}]} {
    %c0_i32 = arith.constant 0 : i32
    %0 = arith.cmpi eq, %arg1, %c0_i32 : i32
    %1 = arith.extui %0 : i1 to i32
    %c0_i32_0 = arith.constant 0 : i32
    %2 = arith.cmpi ne, %1, %c0_i32_0 : i32
    scf.if %2 {
      %c0_77 = arith.constant 0 : index
      %c0_78 = arith.constant 0 : index
      %c0_79 = arith.constant 0 : index
      %197 = vector.load %arg2[%c0_77, %c0_78, %c0_79] : memref<1x8x32xf32, #tpu.memory_space<vmem>>, vector<1x8x32xf32>
      %198 = vector.shape_cast %197 : vector<1x8x32xf32> to vector<8x32xf32>
      %c0_80 = arith.constant 0 : index
      %c0_81 = arith.constant 0 : index
      %199 = vector.load %arg3[%c0_80, %c0_81] : memref<8x32xf32, #tpu.memory_space<vmem>>, vector<8x32xf32>
      %200 = arith.addf %198, %199 : vector<8x32xf32>
      %c0_82 = arith.constant 0 : index
      %c0_83 = arith.constant 0 : index
      %201 = vector.load %arg19[%c0_82, %c0_83] : memref<8x32xf32, #tpu.memory_space<vmem>>, vector<8x32xf32>
      tpu.vector_store %arg19[%c0_82, %c0_83], %200 {strides = array<i32>} : memref<8x32xf32, #tpu.memory_space<vmem>>, vector<8x32xf32>,
    } else {
    }
    %c0 = arith.constant 0 : index
    %c0_1 = arith.constant 0 : index
    %3 = vector.load %arg19[%c0, %c0_1] : memref<8x32xf32, #tpu.memory_space<vmem>>, vector<8x32xf32>
    %4 = arith.truncf %3 : vector<8x32xf32> to vector<8x32xbf16>
    %c0_2 = arith.constant 0 : index
    %c0_3 = arith.constant 0 : index
    %c0_4 = arith.constant 0 : index
    %5 = vector.load %arg4[%c0_2, %c0_3, %c0_4] : memref<1x32x96xbf16, #tpu.memory_space<vmem>>, vector<1x32x96xbf16>
    %6 = vector.shape_cast %5 : vector<1x32x96xbf16> to vector<32x96xbf16>
    %cst = arith.constant dense<0.000000e+00> : vector<8x96xf32>
    %7 = tpu.matmul %4, %6, %cst {dimension_numbers = #tpu.dot_dimension_numbers<[1], [0], [0], [1], [0, 0, 1, 1], [], []>} : vector<8x32xbf16>, vector<32x96xbf16>, vector<8x96xf32> -> vector<8x96xf32>
    %c0_5 = arith.constant 0 : index
    %c0_6 = arith.constant 0 : index
    %c0_7 = arith.constant 0 : index
    %8 = vector.load %arg5[%c0_5, %c0_6, %c0_7] : memref<1x1x96xf32, #tpu.memory_space<vmem>>, vector<1x1x96xf32>
    %9 = vector.shape_cast %8 : vector<1x1x96xf32> to vector<1x96xf32>
    %10 = vector.broadcast %9 : vector<1x96xf32> to vector<8x96xf32>
    %11 = arith.addf %7, %10 : vector<8x96xf32>
    %12 = tpu.iota {dimensions = array<i32: 0>} : vector<8x8xi32>
    %13 = tpu.iota {dimensions = array<i32: 1>} : vector<8x8xi32>
    %14 = arith.cmpi sle, %13, %12 : vector<8x8xi32>
    %cst_8 = arith.constant 0.000000e+00 : f32
    %cst_9 = arith.constant -1.000000e+09 : f32
    %15 = vector.broadcast %cst_8 : f32 to vector<8x8xf32>
    %16 = vector.broadcast %cst_9 : f32 to vector<8x8xf32>
    %17 = arith.select %14, %15, %16 : vector<8x8xi1>, vector<8x8xf32>
    %c0_10 = arith.constant 0 : index
    %c0_11 = arith.constant 0 : index
    %c0_12 = arith.constant 0 : index
    %18 = vector.load %arg6[%c0_10, %c0_11, %c0_12] : memref<1x32x32xbf16, #tpu.memory_space<vmem>>, vector<1x32x32xbf16>
    %19 = vector.shape_cast %18 : vector<1x32x32xbf16> to vector<32x32xbf16>
    %cst_13 = arith.constant 0.000000e+00 : f32
    %20 = vector.broadcast %cst_13 : f32 to vector<8x32xf32>
    %21 = vector.extract_strided_slice %11 {offsets = [0, 0], sizes = [8, 8], strides = [1, 1]} : vector<8x96xf32> to vector<8x8xf32>
    %22 = arith.truncf %21 : vector<8x8xf32> to vector<8x8xbf16>
    %23 = vector.extract_strided_slice %11 {offsets = [0, 32], sizes = [8, 8], strides = [1, 1]} : vector<8x96xf32> to vector<8x8xf32>
    %24 = arith.truncf %23 : vector<8x8xf32> to vector<8x8xbf16>
    %25 = vector.extract_strided_slice %11 {offsets = [0, 64], sizes = [8, 8], strides = [1, 1]} : vector<8x96xf32> to vector<8x8xf32>
    %26 = arith.truncf %25 : vector<8x8xf32> to vector<8x8xbf16>
    %cst_14 = arith.constant dense<0.000000e+00> : vector<8x8xf32>
    %27 = tpu.matmul %22, %24, %cst_14 {dimension_numbers = #tpu.dot_dimension_numbers<[1], [1], [0], [0], [0, 0, 1, 0], [], []>} : vector<8x8xbf16>, vector<8x8xbf16>, vector<8x8xf32> -> vector<8x8xf32>
    %28 = arith.addf %27, %17 : vector<8x8xf32>
    %cst_15 = arith.constant dense<0xFF800000> : vector<8xf32>
    %29 = vector.multi_reduction <maximumf>, %28, %cst_15 [1] : vector<8x8xf32> to vector<8xf32>
    %30 = vector.shape_cast %29 : vector<8xf32> to vector<8x1xf32>
    %31 = vector.broadcast %30 : vector<8x1xf32> to vector<8x8xf32>
    %32 = arith.subf %28, %31 : vector<8x8xf32>
    %33 = math.exp %32 : vector<8x8xf32>
    %cst_16 = arith.constant dense<0.000000e+00> : vector<8xf32>
    %34 = vector.multi_reduction <add>, %33, %cst_16 [1] : vector<8x8xf32> to vector<8xf32>
    %35 = vector.shape_cast %34 : vector<8xf32> to vector<8x1xf32>
    %36 = tpu.reciprocal %35 {approx = true} : vector<8x1xf32> -> vector<8x1xf32>
    %37 = vector.broadcast %36 : vector<8x1xf32> to vector<8x8xf32>
    %38 = arith.mulf %33, %37 : vector<8x8xf32>
    %39 = arith.truncf %38 : vector<8x8xf32> to vector<8x8xbf16>
    %cst_17 = arith.constant dense<0.000000e+00> : vector<8x8xf32>
    %40 = tpu.matmul %39, %26, %cst_17 {dimension_numbers = #tpu.dot_dimension_numbers<[1], [0], [0], [1], [0, 0, 1, 1], [], []>} : vector<8x8xbf16>, vector<8x8xbf16>, vector<8x8xf32> -> vector<8x8xf32>
    %41 = arith.truncf %40 : vector<8x8xf32> to vector<8x8xbf16>
    %42 = vector.extract_strided_slice %19 {offsets = [0, 0], sizes = [8, 32], strides = [1, 1]} : vector<32x32xbf16> to vector<8x32xbf16>
    %cst_18 = arith.constant dense<0.000000e+00> : vector<8x32xf32>
    %43 = tpu.matmul %41, %42, %cst_18 {dimension_numbers = #tpu.dot_dimension_numbers<[1], [0], [0], [1], [0, 0, 1, 1], [], []>} : vector<8x8xbf16>, vector<8x32xbf16>, vector<8x32xf32> -> vector<8x32xf32>
    %44 = arith.addf %20, %43 : vector<8x32xf32>
    %45 = vector.extract_strided_slice %11 {offsets = [0, 8], sizes = [8, 8], strides = [1, 1]} : vector<8x96xf32> to vector<8x8xf32>
    %46 = arith.truncf %45 : vector<8x8xf32> to vector<8x8xbf16>
    %47 = vector.extract_strided_slice %11 {offsets = [0, 40], sizes = [8, 8], strides = [1, 1]} : vector<8x96xf32> to vector<8x8xf32>
    %48 = arith.truncf %47 : vector<8x8xf32> to vector<8x8xbf16>
    %49 = vector.extract_strided_slice %11 {offsets = [0, 72], sizes = [8, 8], strides = [1, 1]} : vector<8x96xf32> to vector<8x8xf32>
    %50 = arith.truncf %49 : vector<8x8xf32> to vector<8x8xbf16>
    %cst_19 = arith.constant dense<0.000000e+00> : vector<8x8xf32>
    %51 = tpu.matmul %46, %48, %cst_19 {dimension_numbers = #tpu.dot_dimension_numbers<[1], [1], [0], [0], [0, 0, 1, 0], [], []>} : vector<8x8xbf16>, vector<8x8xbf16>, vector<8x8xf32> -> vector<8x8xf32>
    %52 = arith.addf %51, %17 : vector<8x8xf32>
    %cst_20 = arith.constant dense<0xFF800000> : vector<8xf32>
    %53 = vector.multi_reduction <maximumf>, %52, %cst_20 [1] : vector<8x8xf32> to vector<8xf32>
    %54 = vector.shape_cast %53 : vector<8xf32> to vector<8x1xf32>
    %55 = vector.broadcast %54 : vector<8x1xf32> to vector<8x8xf32>
    %56 = arith.subf %52, %55 : vector<8x8xf32>
    %57 = math.exp %56 : vector<8x8xf32>
    %cst_21 = arith.constant dense<0.000000e+00> : vector<8xf32>
    %58 = vector.multi_reduction <add>, %57, %cst_21 [1] : vector<8x8xf32> to vector<8xf32>
    %59 = vector.shape_cast %58 : vector<8xf32> to vector<8x1xf32>
    %60 = tpu.reciprocal %59 {approx = true} : vector<8x1xf32> -> vector<8x1xf32>
    %61 = vector.broadcast %60 : vector<8x1xf32> to vector<8x8xf32>
    %62 = arith.mulf %57, %61 : vector<8x8xf32>
    %63 = arith.truncf %62 : vector<8x8xf32> to vector<8x8xbf16>
    %cst_22 = arith.constant dense<0.000000e+00> : vector<8x8xf32>
    %64 = tpu.matmul %63, %50, %cst_22 {dimension_numbers = #tpu.dot_dimension_numbers<[1], [0], [0], [1], [0, 0, 1, 1], [], []>} : vector<8x8xbf16>, vector<8x8xbf16>, vector<8x8xf32> -> vector<8x8xf32>
    %65 = arith.truncf %64 : vector<8x8xf32> to vector<8x8xbf16>
    %66 = vector.extract_strided_slice %19 {offsets = [8, 0], sizes = [8, 32], strides = [1, 1]} : vector<32x32xbf16> to vector<8x32xbf16>
    %cst_23 = arith.constant dense<0.000000e+00> : vector<8x32xf32>
    %67 = tpu.matmul %65, %66, %cst_23 {dimension_numbers = #tpu.dot_dimension_numbers<[1], [0], [0], [1], [0, 0, 1, 1], [], []>} : vector<8x8xbf16>, vector<8x32xbf16>, vector<8x32xf32> -> vector<8x32xf32>
    %68 = arith.addf %44, %67 : vector<8x32xf32>
    %69 = vector.extract_strided_slice %11 {offsets = [0, 16], sizes = [8, 8], strides = [1, 1]} : vector<8x96xf32> to vector<8x8xf32>
    %70 = arith.truncf %69 : vector<8x8xf32> to vector<8x8xbf16>
    %71 = vector.extract_strided_slice %11 {offsets = [0, 48], sizes = [8, 8], strides = [1, 1]} : vector<8x96xf32> to vector<8x8xf32>
    %72 = arith.truncf %71 : vector<8x8xf32> to vector<8x8xbf16>
    %73 = vector.extract_strided_slice %11 {offsets = [0, 80], sizes = [8, 8], strides = [1, 1]} : vector<8x96xf32> to vector<8x8xf32>
    %74 = arith.truncf %73 : vector<8x8xf32> to vector<8x8xbf16>
    %cst_24 = arith.constant dense<0.000000e+00> : vector<8x8xf32>
    %75 = tpu.matmul %70, %72, %cst_24 {dimension_numbers = #tpu.dot_dimension_numbers<[1], [1], [0], [0], [0, 0, 1, 0], [], []>} : vector<8x8xbf16>, vector<8x8xbf16>, vector<8x8xf32> -> vector<8x8xf32>
    %76 = arith.addf %75, %17 : vector<8x8xf32>
    %cst_25 = arith.constant dense<0xFF800000> : vector<8xf32>
    %77 = vector.multi_reduction <maximumf>, %76, %cst_25 [1] : vector<8x8xf32> to vector<8xf32>
    %78 = vector.shape_cast %77 : vector<8xf32> to vector<8x1xf32>
    %79 = vector.broadcast %78 : vector<8x1xf32> to vector<8x8xf32>
    %80 = arith.subf %76, %79 : vector<8x8xf32>
    %81 = math.exp %80 : vector<8x8xf32>
    %cst_26 = arith.constant dense<0.000000e+00> : vector<8xf32>
    %82 = vector.multi_reduction <add>, %81, %cst_26 [1] : vector<8x8xf32> to vector<8xf32>
    %83 = vector.shape_cast %82 : vector<8xf32> to vector<8x1xf32>
    %84 = tpu.reciprocal %83 {approx = true} : vector<8x1xf32> -> vector<8x1xf32>
    %85 = vector.broadcast %84 : vector<8x1xf32> to vector<8x8xf32>
    %86 = arith.mulf %81, %85 : vector<8x8xf32>
    %87 = arith.truncf %86 : vector<8x8xf32> to vector<8x8xbf16>
    %cst_27 = arith.constant dense<0.000000e+00> : vector<8x8xf32>
    %88 = tpu.matmul %87, %74, %cst_27 {dimension_numbers = #tpu.dot_dimension_numbers<[1], [0], [0], [1], [0, 0, 1, 1], [], []>} : vector<8x8xbf16>, vector<8x8xbf16>, vector<8x8xf32> -> vector<8x8xf32>
    %89 = arith.truncf %88 : vector<8x8xf32> to vector<8x8xbf16>
    %90 = vector.extract_strided_slice %19 {offsets = [16, 0], sizes = [8, 32], strides = [1, 1]} : vector<32x32xbf16> to vector<8x32xbf16>
    %cst_28 = arith.constant dense<0.000000e+00> : vector<8x32xf32>
    %91 = tpu.matmul %89, %90, %cst_28 {dimension_numbers = #tpu.dot_dimension_numbers<[1], [0], [0], [1], [0, 0, 1, 1], [], []>} : vector<8x8xbf16>, vector<8x32xbf16>, vector<8x32xf32> -> vector<8x32xf32>
    %92 = arith.addf %68, %91 : vector<8x32xf32>
    %93 = vector.extract_strided_slice %11 {offsets = [0, 24], sizes = [8, 8], strides = [1, 1]} : vector<8x96xf32> to vector<8x8xf32>
    %94 = arith.truncf %93 : vector<8x8xf32> to vector<8x8xbf16>
    %95 = vector.extract_strided_slice %11 {offsets = [0, 56], sizes = [8, 8], strides = [1, 1]} : vector<8x96xf32> to vector<8x8xf32>
    %96 = arith.truncf %95 : vector<8x8xf32> to vector<8x8xbf16>
    %97 = vector.extract_strided_slice %11 {offsets = [0, 88], sizes = [8, 8], strides = [1, 1]} : vector<8x96xf32> to vector<8x8xf32>
    %98 = arith.truncf %97 : vector<8x8xf32> to vector<8x8xbf16>
    %cst_29 = arith.constant dense<0.000000e+00> : vector<8x8xf32>
    %99 = tpu.matmul %94, %96, %cst_29 {dimension_numbers = #tpu.dot_dimension_numbers<[1], [1], [0], [0], [0, 0, 1, 0], [], []>} : vector<8x8xbf16>, vector<8x8xbf16>, vector<8x8xf32> -> vector<8x8xf32>
    %100 = arith.addf %99, %17 : vector<8x8xf32>
    %cst_30 = arith.constant dense<0xFF800000> : vector<8xf32>
    %101 = vector.multi_reduction <maximumf>, %100, %cst_30 [1] : vector<8x8xf32> to vector<8xf32>
    %102 = vector.shape_cast %101 : vector<8xf32> to vector<8x1xf32>
    %103 = vector.broadcast %102 : vector<8x1xf32> to vector<8x8xf32>
    %104 = arith.subf %100, %103 : vector<8x8xf32>
    %105 = math.exp %104 : vector<8x8xf32>
    %cst_31 = arith.constant dense<0.000000e+00> : vector<8xf32>
    %106 = vector.multi_reduction <add>, %105, %cst_31 [1] : vector<8x8xf32> to vector<8xf32>
    %107 = vector.shape_cast %106 : vector<8xf32> to vector<8x1xf32>
    %108 = tpu.reciprocal %107 {approx = true} : vector<8x1xf32> -> vector<8x1xf32>
    %109 = vector.broadcast %108 : vector<8x1xf32> to vector<8x8xf32>
    %110 = arith.mulf %105, %109 : vector<8x8xf32>
    %111 = arith.truncf %110 : vector<8x8xf32> to vector<8x8xbf16>
    %cst_32 = arith.constant dense<0.000000e+00> : vector<8x8xf32>
    %112 = tpu.matmul %111, %98, %cst_32 {dimension_numbers = #tpu.dot_dimension_numbers<[1], [0], [0], [1], [0, 0, 1, 1], [], []>} : vector<8x8xbf16>, vector<8x8xbf16>, vector<8x8xf32> -> vector<8x8xf32>
    %113 = arith.truncf %112 : vector<8x8xf32> to vector<8x8xbf16>
    %114 = vector.extract_strided_slice %19 {offsets = [24, 0], sizes = [8, 32], strides = [1, 1]} : vector<32x32xbf16> to vector<8x32xbf16>
    %cst_33 = arith.constant dense<0.000000e+00> : vector<8x32xf32>
    %115 = tpu.matmul %113, %114, %cst_33 {dimension_numbers = #tpu.dot_dimension_numbers<[1], [0], [0], [1], [0, 0, 1, 1], [], []>} : vector<8x8xbf16>, vector<8x32xbf16>, vector<8x32xf32> -> vector<8x32xf32>
    %116 = arith.addf %92, %115 : vector<8x32xf32>
    %c0_34 = arith.constant 0 : index
    %c0_35 = arith.constant 0 : index
    %c0_36 = arith.constant 0 : index
    %117 = vector.load %arg7[%c0_34, %c0_35, %c0_36] : memref<1x1x32xf32, #tpu.memory_space<vmem>>, vector<1x1x32xf32>
    %118 = vector.shape_cast %117 : vector<1x1x32xf32> to vector<1x32xf32>
    %119 = vector.broadcast %118 : vector<1x32xf32> to vector<8x32xf32>
    %120 = arith.addf %116, %119 : vector<8x32xf32>
    %121 = arith.addf %3, %120 : vector<8x32xf32>
    %c0_37 = arith.constant 0 : index
    %c0_38 = arith.constant 0 : index
    %c0_39 = arith.constant 0 : index
    %122 = vector.load %arg8[%c0_37, %c0_38, %c0_39] : memref<1x1x32xf32, #tpu.memory_space<vmem>>, vector<1x1x32xf32>
    %123 = vector.shape_cast %122 : vector<1x1x32xf32> to vector<1x32xf32>
    %c0_40 = arith.constant 0 : index
    %c0_41 = arith.constant 0 : index
    %c0_42 = arith.constant 0 : index
    %124 = vector.load %arg9[%c0_40, %c0_41, %c0_42] : memref<1x1x32xf32, #tpu.memory_space<vmem>>, vector<1x1x32xf32>
    %125 = vector.shape_cast %124 : vector<1x1x32xf32> to vector<1x32xf32>
    %cst_43 = arith.constant dense<0.000000e+00> : vector<8xf32>
    %126 = vector.multi_reduction <add>, %121, %cst_43 [1] : vector<8x32xf32> to vector<8xf32>
    %127 = vector.shape_cast %126 : vector<8xf32> to vector<8x1xf32>
    %cst_44 = arith.constant 3.200000e+01 : f32
    %128 = vector.broadcast %cst_44 : f32 to vector<8x1xf32>
    %129 = arith.divf %127, %128 : vector<8x1xf32>
    %130 = vector.broadcast %129 : vector<8x1xf32> to vector<8x32xf32>
    %131 = arith.subf %121, %130 : vector<8x32xf32>
    %132 = arith.mulf %131, %131 : vector<8x32xf32>
    %cst_45 = arith.constant dense<0.000000e+00> : vector<8xf32>
    %133 = vector.multi_reduction <add>, %132, %cst_45 [1] : vector<8x32xf32> to vector<8xf32>
    %134 = vector.shape_cast %133 : vector<8xf32> to vector<8x1xf32>
    %cst_46 = arith.constant 3.200000e+01 : f32
    %135 = vector.broadcast %cst_46 : f32 to vector<8x1xf32>
    %136 = arith.divf %134, %135 : vector<8x1xf32>
    %137 = vector.broadcast %129 : vector<8x1xf32> to vector<8x32xf32>
    %138 = arith.subf %121, %137 : vector<8x32xf32>
    %cst_47 = arith.constant 9.99999974E-6 : f32
    %139 = vector.broadcast %cst_47 : f32 to vector<8x1xf32>
    %140 = arith.addf %136, %139 : vector<8x1xf32>
    %141 = math.rsqrt %140 : vector<8x1xf32>
    %142 = vector.broadcast %141 : vector<8x1xf32> to vector<8x32xf32>
    %143 = arith.mulf %138, %142 : vector<8x32xf32>
    %144 = vector.broadcast %123 : vector<1x32xf32> to vector<8x32xf32>
    %145 = arith.mulf %143, %144 : vector<8x32xf32>
    %146 = vector.broadcast %125 : vector<1x32xf32> to vector<8x32xf32>
    %147 = arith.addf %145, %146 : vector<8x32xf32>
    %148 = arith.truncf %147 : vector<8x32xf32> to vector<8x32xbf16>
    %c0_48 = arith.constant 0 : index
    %c0_49 = arith.constant 0 : index
    %c0_50 = arith.constant 0 : index
    %149 = vector.load %arg10[%c0_48, %c0_49, %c0_50] : memref<1x32x64xbf16, #tpu.memory_space<vmem>>, vector<1x32x64xbf16>
    %150 = vector.shape_cast %149 : vector<1x32x64xbf16> to vector<32x64xbf16>
    %cst_51 = arith.constant dense<0.000000e+00> : vector<8x64xf32>
    %151 = tpu.matmul %148, %150, %cst_51 {dimension_numbers = #tpu.dot_dimension_numbers<[1], [0], [0], [1], [0, 0, 1, 1], [], []>} : vector<8x32xbf16>, vector<32x64xbf16>, vector<8x64xf32> -> vector<8x64xf32>
    %c0_52 = arith.constant 0 : index
    %c0_53 = arith.constant 0 : index
    %c0_54 = arith.constant 0 : index
    %152 = vector.load %arg11[%c0_52, %c0_53, %c0_54] : memref<1x1x64xf32, #tpu.memory_space<vmem>>, vector<1x1x64xf32>
    %153 = vector.shape_cast %152 : vector<1x1x64xf32> to vector<1x64xf32>
    %154 = vector.broadcast %153 : vector<1x64xf32> to vector<8x64xf32>
    %155 = arith.addf %151, %154 : vector<8x64xf32>
    %cst_55 = arith.constant 0.000000e+00 : f32
    %156 = vector.broadcast %cst_55 : f32 to vector<8x64xf32>
    %157 = arith.maximumf %155, %156 : vector<8x64xf32>
    %158 = arith.truncf %157 : vector<8x64xf32> to vector<8x64xbf16>
    %c0_56 = arith.constant 0 : index
    %c0_57 = arith.constant 0 : index
    %c0_58 = arith.constant 0 : index
    %159 = vector.load %arg12[%c0_56, %c0_57, %c0_58] : memref<1x64x32xbf16, #tpu.memory_space<vmem>>, vector<1x64x32xbf16>
    %160 = vector.shape_cast %159 : vector<1x64x32xbf16> to vector<64x32xbf16>
    %cst_59 = arith.constant dense<0.000000e+00> : vector<8x32xf32>
    %161 = tpu.matmul %158, %160, %cst_59 {dimension_numbers = #tpu.dot_dimension_numbers<[1], [0], [0], [1], [0, 0, 1, 1], [], []>} : vector<8x64xbf16>, vector<64x32xbf16>, vector<8x32xf32> -> vector<8x32xf32>
    %c0_60 = arith.constant 0 : index
    %c0_61 = arith.constant 0 : index
    %c0_62 = arith.constant 0 : index
    %162 = vector.load %arg13[%c0_60, %c0_61, %c0_62] : memref<1x1x32xf32, #tpu.memory_space<vmem>>, vector<1x1x32xf32>
    %163 = vector.shape_cast %162 : vector<1x1x32xf32> to vector<1x32xf32>
    %164 = vector.broadcast %163 : vector<1x32xf32> to vector<8x32xf32>
    %165 = arith.addf %161, %164 : vector<8x32xf32>
    %166 = arith.addf %147, %165 : vector<8x32xf32>
    %c0_63 = arith.constant 0 : index
    %c0_64 = arith.constant 0 : index
    %c0_65 = arith.constant 0 : index
    %167 = vector.load %arg14[%c0_63, %c0_64, %c0_65] : memref<1x1x32xf32, #tpu.memory_space<vmem>>, vector<1x1x32xf32>
    %168 = vector.shape_cast %167 : vector<1x1x32xf32> to vector<1x32xf32>
    %c0_66 = arith.constant 0 : index
    %c0_67 = arith.constant 0 : index
    %c0_68 = arith.constant 0 : index
    %169 = vector.load %arg15[%c0_66, %c0_67, %c0_68] : memref<1x1x32xf32, #tpu.memory_space<vmem>>, vector<1x1x32xf32>
    %170 = vector.shape_cast %169 : vector<1x1x32xf32> to vector<1x32xf32>
    %cst_69 = arith.constant dense<0.000000e+00> : vector<8xf32>
    %171 = vector.multi_reduction <add>, %166, %cst_69 [1] : vector<8x32xf32> to vector<8xf32>
    %172 = vector.shape_cast %171 : vector<8xf32> to vector<8x1xf32>
    %cst_70 = arith.constant 3.200000e+01 : f32
    %173 = vector.broadcast %cst_70 : f32 to vector<8x1xf32>
    %174 = arith.divf %172, %173 : vector<8x1xf32>
    %175 = vector.broadcast %174 : vector<8x1xf32> to vector<8x32xf32>
    %176 = arith.subf %166, %175 : vector<8x32xf32>
    %177 = arith.mulf %176, %176 : vector<8x32xf32>
    %cst_71 = arith.constant dense<0.000000e+00> : vector<8xf32>
    %178 = vector.multi_reduction <add>, %177, %cst_71 [1] : vector<8x32xf32> to vector<8xf32>
    %179 = vector.shape_cast %178 : vector<8xf32> to vector<8x1xf32>
    %cst_72 = arith.constant 3.200000e+01 : f32
    %180 = vector.broadcast %cst_72 : f32 to vector<8x1xf32>
    %181 = arith.divf %179, %180 : vector<8x1xf32>
    %182 = vector.broadcast %174 : vector<8x1xf32> to vector<8x32xf32>
    %183 = arith.subf %166, %182 : vector<8x32xf32>
    %cst_73 = arith.constant 9.99999974E-6 : f32
    %184 = vector.broadcast %cst_73 : f32 to vector<8x1xf32>
    %185 = arith.addf %181, %184 : vector<8x1xf32>
    %186 = math.rsqrt %185 : vector<8x1xf32>
    %187 = vector.broadcast %186 : vector<8x1xf32> to vector<8x32xf32>
    %188 = arith.mulf %183, %187 : vector<8x32xf32>
    %189 = vector.broadcast %168 : vector<1x32xf32> to vector<8x32xf32>
    %190 = arith.mulf %188, %189 : vector<8x32xf32>
    %191 = vector.broadcast %170 : vector<1x32xf32> to vector<8x32xf32>
    %192 = arith.addf %190, %191 : vector<8x32xf32>
    %c0_74 = arith.constant 0 : index
    %c0_75 = arith.constant 0 : index
    %193 = vector.load %arg19[%c0_74, %c0_75] : memref<8x32xf32, #tpu.memory_space<vmem>>, vector<8x32xf32>
    tpu.vector_store %arg19[%c0_74, %c0_75], %192 {strides = array<i32>} : memref<8x32xf32, #tpu.memory_space<vmem>>, vector<8x32xf32>,
    %c1_i32 = arith.constant 1 : i32
    %194 = arith.cmpi eq, %arg1, %c1_i32 : i32
    %195 = arith.extui %194 : i1 to i32
    %c0_i32_76 = arith.constant 0 : i32
    %196 = arith.cmpi ne, %195, %c0_i32_76 : i32
    scf.if %196 {
      %197 = arith.truncf %192 : vector<8x32xf32> to vector<8x32xbf16>
      %c0_77 = arith.constant 0 : index
      %c0_78 = arith.constant 0 : index
      %198 = vector.load %arg16[%c0_77, %c0_78] : memref<32x128xbf16, #tpu.memory_space<vmem>>, vector<32x128xbf16>
      %cst_79 = arith.constant dense<0.000000e+00> : vector<8x128xf32>
      %199 = tpu.matmul %197, %198, %cst_79 {dimension_numbers = #tpu.dot_dimension_numbers<[1], [0], [0], [1], [0, 0, 1, 1], [], []>} : vector<8x32xbf16>, vector<32x128xbf16>, vector<8x128xf32> -> vector<8x128xf32>
      %c0_80 = arith.constant 0 : index
      %c0_81 = arith.constant 0 : index
      %200 = vector.load %arg17[%c0_80, %c0_81] : memref<1x128xf32, #tpu.memory_space<vmem>>, vector<1x128xf32>
      %201 = vector.broadcast %200 : vector<1x128xf32> to vector<8x128xf32>
      %202 = arith.addf %199, %201 : vector<8x128xf32>
      %cst_82 = arith.constant dense<0xFF800000> : vector<8xf32>
      %203 = vector.multi_reduction <maximumf>, %202, %cst_82 [1] : vector<8x128xf32> to vector<8xf32>
      %204 = vector.shape_cast %203 : vector<8xf32> to vector<8x1xf32>
      %205 = vector.broadcast %204 : vector<8x1xf32> to vector<8x128xf32>
      %206 = arith.subf %202, %205 : vector<8x128xf32>
      %207 = math.exp %206 : vector<8x128xf32>
      %cst_83 = arith.constant dense<0.000000e+00> : vector<8xf32>
      %208 = vector.multi_reduction <add>, %207, %cst_83 [1] : vector<8x128xf32> to vector<8xf32>
      %209 = vector.shape_cast %208 : vector<8xf32> to vector<8x1xf32>
      %210 = math.log %209 : vector<8x1xf32>
      %211 = vector.broadcast %210 : vector<8x1xf32> to vector<8x128xf32>
      %212 = arith.subf %206, %211 : vector<8x128xf32>
      %c0_84 = arith.constant 0 : index
      %c0_85 = arith.constant 0 : index
      %c0_86 = arith.constant 0 : index
      %213 = vector.load %arg18[%c0_84, %c0_85, %c0_86] : memref<1x8x128xf32, #tpu.memory_space<vmem>>, vector<1x8x128xf32>
      %214 = vector.shape_cast %213 : vector<1x8x128xf32> to vector<8x128xf32>
      %215 = vector.shape_cast %212 : vector<8x128xf32> to vector<1x8x128xf32>
      tpu.vector_store %arg18[%c0_84, %c0_85, %c0_86], %215 {strides = array<i32>} : memref<1x8x128xf32, #tpu.memory_space<vmem>>, vector<1x8x128xf32>,
    } else {
    }
    return
  }
  func.func @transform_0(%arg0: i32, %arg1: i32) -> (i32, i32, i32) {
    %c0_i32 = arith.constant 0 : i32
    %c0_i32_0 = arith.constant 0 : i32
    %c0_i32_1 = arith.constant 0 : i32
    return %arg0, %c0_i32, %c0_i32_0 : i32, i32, i32
  }
  func.func @transform_1(%arg0: i32, %arg1: i32) -> (i32, i32) {
    %c0_i32 = arith.constant 0 : i32
    %c0_i32_0 = arith.constant 0 : i32
    %c0_i32_1 = arith.constant 0 : i32
    return %c0_i32, %c0_i32_0 : i32, i32
  }
  func.func @transform_2(%arg0: i32, %arg1: i32) -> (i32, i32, i32) {
    %c0_i32 = arith.constant 0 : i32
    %c0_i32_0 = arith.constant 0 : i32
    %c0_i32_1 = arith.constant 0 : i32
    return %arg1, %c0_i32, %c0_i32_0 : i32, i32, i32
  }
  func.func @transform_3(%arg0: i32, %arg1: i32) -> (i32, i32, i32) {
    %c0_i32 = arith.constant 0 : i32
    %c0_i32_0 = arith.constant 0 : i32
    %c0_i32_1 = arith.constant 0 : i32
    return %arg1, %c0_i32, %c0_i32_0 : i32, i32, i32
  }
  func.func @transform_4(%arg0: i32, %arg1: i32) -> (i32, i32, i32) {
    %c0_i32 = arith.constant 0 : i32
    %c0_i32_0 = arith.constant 0 : i32
    %c0_i32_1 = arith.constant 0 : i32
    return %arg1, %c0_i32, %c0_i32_0 : i32, i32, i32
  }
  func.func @transform_5(%arg0: i32, %arg1: i32) -> (i32, i32, i32) {
    %c0_i32 = arith.constant 0 : i32
    %c0_i32_0 = arith.constant 0 : i32
    %c0_i32_1 = arith.constant 0 : i32
    return %arg1, %c0_i32, %c0_i32_0 : i32, i32, i32
  }
  func.func @transform_6(%arg0: i32, %arg1: i32) -> (i32, i32, i32) {
    %c0_i32 = arith.constant 0 : i32
    %c0_i32_0 = arith.constant 0 : i32
    %c0_i32_1 = arith.constant 0 : i32
    return %arg1, %c0_i32, %c0_i32_0 : i32, i32, i32
  }
  func.func @transform_7(%arg0: i32, %arg1: i32) -> (i32, i32, i32) {
    %c0_i32 = arith.constant 0 : i32
    %c0_i32_0 = arith.constant 0 : i32
    %c0_i32_1 = arith.constant 0 : i32
    return %arg1, %c0_i32, %c0_i32_0 : i32, i32, i32
  }
  func.func @transform_8(%arg0: i32, %arg1: i32) -> (i32, i32, i32) {
    %c0_i32 = arith.constant 0 : i32
    %c0_i32_0 = arith.constant 0 : i32
    %c0_i32_1 = arith.constant 0 : i32
    return %arg1, %c0_i32, %c0_i32_0 : i32, i32, i32
  }
  func.func @transform_9(%arg0: i32, %arg1: i32) -> (i32, i32, i32) {
    %c0_i32 = arith.constant 0 : i32
    %c0_i32_0 = arith.constant 0 : i32
    %c0_i32_1 = arith.constant 0 : i32
    return %arg1, %c0_i32, %c0_i32_0 : i32, i32, i32
  }
  func.func @transform_10(%arg0: i32, %arg1: i32) -> (i32, i32, i32) {
    %c0_i32 = arith.constant 0 : i32
    %c0_i32_0 = arith.constant 0 : i32
    %c0_i32_1 = arith.constant 0 : i32
    return %arg1, %c0_i32, %c0_i32_0 : i32, i32, i32
  }
  func.func @transform_11(%arg0: i32, %arg1: i32) -> (i32, i32, i32) {
    %c0_i32 = arith.constant 0 : i32
    %c0_i32_0 = arith.constant 0 : i32
    %c0_i32_1 = arith.constant 0 : i32
    return %arg1, %c0_i32, %c0_i32_0 : i32, i32, i32
  }
  func.func @transform_12(%arg0: i32, %arg1: i32) -> (i32, i32, i32) {
    %c0_i32 = arith.constant 0 : i32
    %c0_i32_0 = arith.constant 0 : i32
    %c0_i32_1 = arith.constant 0 : i32
    return %arg1, %c0_i32, %c0_i32_0 : i32, i32, i32
  }
  func.func @transform_13(%arg0: i32, %arg1: i32) -> (i32, i32, i32) {
    %c0_i32 = arith.constant 0 : i32
    %c0_i32_0 = arith.constant 0 : i32
    %c0_i32_1 = arith.constant 0 : i32
    return %arg1, %c0_i32, %c0_i32_0 : i32, i32, i32
  }
  func.func @transform_14(%arg0: i32, %arg1: i32) -> (i32, i32) {
    %c0_i32 = arith.constant 0 : i32
    %c0_i32_0 = arith.constant 0 : i32
    %c0_i32_1 = arith.constant 0 : i32
    return %c0_i32, %c0_i32_0 : i32, i32
  }
  func.func @transform_15(%arg0: i32, %arg1: i32) -> (i32, i32) {
    %c0_i32 = arith.constant 0 : i32
    %c0_i32_0 = arith.constant 0 : i32
    %c0_i32_1 = arith.constant 0 : i32
    return %c0_i32, %c0_i32_0 : i32, i32
  }
  func.func @transform_16(%arg0: i32, %arg1: i32) -> (i32, i32, i32) {
    %c0_i32 = arith.constant 0 : i32
    %c0_i32_0 = arith.constant 0 : i32
    %c0_i32_1 = arith.constant 0 : i32
    return %arg0, %c0_i32, %c0_i32_0 : i32, i32, i32
  }
}

</mosaic_0001>

<bundles_post_ra>
// kernel: transformer_forward.1
= control target key start
LH: loop header
LB: loop body
LE: loop exit
PB: predicated region body
PF: predicated region fallthrough
CT: control target
= control target key end

     0   :  { %s2365_s21 = smov 0   ;;  %s2367_s22 = smov 0   ;;  %s2659_s0 = inlined_call_operand.vmem [shape: f32[2,8,32], index: 0, kind: input, shape index: {}]   ;;  %s2660_s1 = inlined_call_operand.vmem [shape: f32[8,32], index: 1, kind: input, shape index: {}]   ;;  %s2661_s2 = inlined_call_operand.vmem [shape: bf16[2,32,96], index: 2, kind: input, shape index: {}]   ;;  %s2662_s3 = inlined_call_operand.vmem [shape: f32[2,1,96], index: 3, kind: input, shape index: {}]   ;;  %s2663_s4 = inlined_call_operand.vmem [shape: bf16[2,32,32], index: 4, kind: input, shape index: {}]   ;;  %s2664_s5 = inlined_call_operand.vmem [shape: f32[2,1,32], index: 5, kind: input, shape index: {}]   ;;  %s2665_s6 = inlined_call_operand.vmem [shape: f32[2,1,32], index: 6, kind: input, shape index: {}]   ;;  %s2666_s7 = inlined_call_operand.vmem [shape: f32[2,1,32], index: 7, kind: input, shape index: {}]   ;;  %s2667_s8 = inlined_call_operand.vmem [shape: bf16[2,32,64], index: 8, kind: input, shape index: {}]   ;;  %s2668_s9 = inlined_call_operand.vmem [shape: f32[2,1,64], index: 9, kind: input, shape index: {}]   ;;  %s2669_s10 = inlined_call_operand.vmem [shape: bf16[2,64,32], index: 10, kind: input, shape index: {}]   ;;  %s2670_s11 = inlined_call_operand.vmem [shape: f32[2,1,32], index: 11, kind: input, shape index: {}]   ;;  %s2671_s12 = inlined_call_operand.vmem [shape: f32[2,1,32], index: 12, kind: input, shape index: {}]   ;;  %s2672_s13 = inlined_call_operand.vmem [shape: f32[2,1,32], index: 13, kind: input, shape index: {}]   ;;  %s2673_s14 = inlined_call_operand.vmem [shape: bf16[32,128], index: 14, kind: input, shape index: {}]   ;;  %s2674_s15 = inlined_call_operand.vmem [shape: f32[1,128], index: 15, kind: input, shape index: {}]   ;;  %s2675_s16 = inlined_call_operand.vmem [shape: f32[2,8,128], index: 16, kind: output, shape index: {}]  }
   0x1   :  { %2681 = sst [smem:[#allocation9_spill]] %s2659_s0  ;;  %s2369_s23 = smov 0  }
   0x2   :  { %2682 = sst [smem:[#allocation10_spill]] %s2660_s1  ;;  %s2371_s24 = smov 0  }
   0x3   :  { %2683 = sst [smem:[#allocation11_spill]] %s2661_s2  ;;  %s2373_s25 = smov 0  }
   0x4   :  { %2684 = sst [smem:[#allocation12_spill]] %s2663_s4 }
   0x5   :  { %2685 = sst [smem:[#allocation13_spill]] %s2667_s8 }
   0x6   :  { %2686 = sst [smem:[#allocation14_spill]] %s2668_s9 }
   0x7   :  { %2687 = sst [smem:[#allocation15_spill]] %s2672_s13 }
   0x8   :  { %2688 = sst [smem:[#allocation16_spill]] %s2673_s14 }
   0x9   :  { %2689 = sst [smem:[#allocation17_spill]] %s2674_s15 }
   0xa   :  { %2690 = sst [smem:[#allocation18_spill]] %s2675_s16 }
   0xb LB: > { %2691 = sst [smem:[#allocation3_spill]] %s2246_s21  ;;  %s35_s26 = sadd.s32 1, %s2254_s23  ;;  %s2262_s25 = sphi %s2373_s25, %s26_s25   ;;  %s2258_s24 = sphi %s2371_s24, %s2721_s24   ;;  %s2254_s23 = sphi %s2369_s23, %s2720_s23   ;;  %s2250_s22 = sphi %s2367_s22, %s2719_s22   ;;  %s2246_s21 = sphi %s2365_s21, %s2718_s21  }
   0xc   : > { %2692 = sst [smem:[#allocation4_spill]] %s2254_s23  ;;  %s38_s27 = sadd.s32 1, %s2258_s24 }
   0xd   : > { %2693 = sst [smem:[#allocation5_spill]] %s2258_s24  ;;  %p36_p0 = scmp.ge.s32.totalorder %s35_s26, 2 }
   0xe   : > { %2694 = sst [smem:[#allocation6_spill]] %s2262_s25  ;;  %p1934_p1 = scmp.ge.s32.totalorder %s2262_s25, 1 }
   0xf   : > { %p577_p2 = scmp.lt.s32.totalorder %s2262_s25, 5  ;;  %s2723_s26 = smov (%p36_p0, %s35_s26), 0 }
  0x10   : > { %2695 = sst [smem:[#allocation7_spill]] %s2723_s26  ;;  %s2725_s27 = smov (!%p36_p0, %s38_s27), %s2258_s24 }
  0x11   : > { %p578_p3 = pnand %p1934_p1, %p577_p2  ;;  %p40_p4 = scmp.ge.s32.totalorder %s2725_s27, 2 }
  0x12   : > { %p669_p5 = scmp.lt.s32.totalorder (!%p578_p3), %s2250_s22, 1  ;;  %p673_p6 = scmp.lt.s32.totalorder (!%p578_p3), %s2246_s21, 1 }
  0x13   : > { %s2727_s27 = smov (%p40_p4, %s2725_s27), 0  ;;  %581 = sbr.rel (%p578_p3) target bundleno = 4246 (0x1096), region = 84 }
  0x14   : > { %2696 = sst [smem:[#allocation8_spill]] %s2727_s27  ;;  %s2697_s17 = sld [smem:[#allocation9_spill]] (!%p578_p3) }
  0x15   : > { %s2698_s2 = sld [smem:[#allocation11_spill]] (!%p578_p3)  ;;  %s2699_s4 = sld [smem:[#allocation12_spill]] (!%p578_p3) }
  0x16   : > { %s2700_s8 = sld [smem:[#allocation13_spill]] (!%p578_p3)  ;;  %s2702_s20 = sld [smem:[#allocation15_spill]] (!%p578_p3) }
  0x17   : > { %s2703_s25 = sld [smem:[#allocation18_spill]] (!%p578_p3) }
  0x1a   : > { %s2729_s22 = smov (!%p669_p5, %s2250_s22), 1 }
  0x1b   : > { %s2399_s28 = scalar_select %p673_p6, %s2246_s21, 1 }
  0x1c   : > { %s1935_s29 = sshll.u32 %s2729_s22, 3  ;;  %s2704_s21 = sld [smem:[#allocation3_spill]] }
  0x1d   : > { %s672_s18 = scalar_lea.vmem %s2697_s17, %s1935_s29  ;;  %s1984_s19 = sshll.u32 %s2399_s28, 4 }
  0x1e   : > { %s677_s26 = scalar_lea.vmem %s2698_s2, %s1984_s19  ;;  %s2415_s1 = scalar_lea.vmem %s2699_s4, %s1984_s19 }
  0x1f   : > { %s2432_s24 = scalar_lea.vmem %s2700_s8, %s1984_s19  ;;  %s1987_s4 = sshll.u32 %s2399_s28, 5 }
  0x20   : > { %s710_s16 = scalar_lea.vmem %s2670_s11, %s2399_s28  ;;  %s2446_s17 = scalar_lea.vmem %s2669_s10, %s1987_s4 }
  0x21   : > { %s713_s2 = scalar_lea.vmem %s2671_s12, %s2399_s28  ;;  %s716_s8 = scalar_lea.vmem %s2702_s20, %s2399_s28 }
  0x22   : > { %s2459_s9 = scalar_lea.vmem %s2703_s25, %s1935_s29  ;;  %p1945_p7 = scmp.ne.s32.totalorder %s2704_s21, 0 }
  0x23   : > { %v726_v0 = vld [vmem:[%s672_s18] sm:$0xff] (!%p1945_p7)  ;;  %s2705_s30 = sld [smem:[#allocation10_spill]] (!%p1945_p7)  ;;  %vm729_vm0 = vcmask (!%p1945_p7), 261120  }
  0x24   : > { %725 = sbr.rel (%p1945_p7) target bundleno = 45 (0x2d), region = 88 }
  0x29   : > { %v727_v1 = vld [vmem:[%s2705_s30] sm:$0xff] (!%p1945_p7) }
  0x2a   : > { %v728_v2 = vadd.f32 (!%p1945_p7), %v727_v1, %v726_v0 }
  0x2c   : > { %730 = vst.msk [vmem:[#allocation2] sm:$0xff] %vm729_vm0, %v728_v2 }
  0x2d PF: > { %v2190_v3 = vld [vmem:[%s677_s26] sm:$0xff]   ;;  %v2264_v4 = vmov 0.0   ;;  %v2191_v5 = vld [vmem:[%s677_s26 + $0x8] sm:$0xff]   ;;  %vm2265_vm1 = vmmov 0   ;;  %vm756_vm2 = vcmask 261120   ;;  %s2706_s29 = scalar_lea.vmem %s2662_s3, %s2399_s28  ;;  %s2266_s18 = smov 120   ;;  %v800_v20 = vlaneseq }
  0x2e   : > { %2026 = vmatprep.subr.bf16.mxu1 %v2264_v4  ;;  %2040 = vmatprep.subr.bf16.mxu0 %v2264_v4  ;;  %v1946_v8 = vld [vmem:[%s2706_s29] ss:$0 sm:$0xff]  ;;  %s2267_s20 = smov 96   ;;  %s2268_s0 = smov 88   ;;  %vm814_vm3 = vcmask 64512   ;;  %vm878_vm5 = vcmask 1043456  }
  0x2f   : > { %2027 = vmatpush3.bf16.msra.mxu1 %v2190_v3  ;;  %2030 = vmatprep.mubr.msk.bf16.mxu1 %vm2265_vm1, %v2264_v4  ;;  %v801_v21 = vshrl.u32 %v800_v20, 7  ;;  %v803_v22 = vand.u32 127, %v800_v20  ;;  %v2269_v23 = vmov -1e+09   ;;  %s2270_s13 = smov 64   ;;  %s2271_s27 = smov 56  }
  0x30   : > { %2028 = vmatprep.subr.bf16.mxu1 %v2264_v4  ;;  %2042 = vmatprep.mubr.msk.bf16.mxu0 %vm2265_vm1, %v2264_v4  ;;  %s2272_s19 = smov 112   ;;  %s2273_s23 = smov 80   ;;  %v806_v59 = vld [vmem:[%s2415_s1] sm:$0xf]  ;;  %v807_v61 = vld [vmem:[%s2415_s1 + $0x4] sm:$0xf] }
  0x31   : > { %vm804_vm4 = vcmp.le.s32.totalorder %v803_v22, %v801_v21  ;;  %v1084_v60 = vsel %vm878_vm5, %v806_v59, 0  ;;  %v1038_v62 = vsel %vm878_vm5, %v807_v61, 0  ;;  %s2274_s14 = smov 72   ;;  %s2275_s15 = smov 104   ;;  %vm1589_vm6 = vcmask 523264  }
  0x32   : > { %v2501_v24 = vsel %vm804_vm4, 0.0, %v2269_v23  ;;  %s2276_s21 = smov 48   ;;  %s2277_s22 = smov 40  }
  0x33   : > { %v2469_v6 = vld [vmem:[#allocation2] sm:$0xff]  ;;  %2029 = vmatpush3.bf16.msra.mxu1 %v2191_v5  ;;  %s2707_s30 = scalar_lea.vmem %s2664_s5, %s2399_s28  ;;  %s2708_s26 = scalar_lea.vmem %s2665_s6, %s2399_s28 }
  0x34   : > { %v732_v7 = vpack.c.bf16 %v2469_v6, %v2469_v6  ;;  %2034 = vmatprep.subr.bf16.mxu1 %v2264_v4 }
  0x36   : > { %2031 = vmatmul.mubr.msk.bf16.vlgmr.msra.gmra.mrb[0].mxu1 %vm756_vm2, %v732_v7 }
  0x37   : > { %2036 = vmatprep.mubr.msk.bf16.mxu1 %vm2265_vm1, %v2264_v4 }
 0x109   : > { %v794_v9 = vpop.f32.mrb[0].mxu1 }
 0x10a   : > { %v795_v10 = vadd.f32 %v1946_v8, %v794_v9  ;;  %v2032_v11 = vpop.f32.mrb[1].mxu1 }
 0x10b   : > { %v797_v12 = vpop.f32.mrb[2].mxu1 }
 0x10c   : > { %v2485_v13 = vpack.c.bf16 %v795_v10, %v795_v10  ;;  %v2033_v14 = vpop.f32.mrb[3].mxu1 }
 0x10e   : > { %923 = vrot.lane.b32.xlu1 %v2485_v13, %s2266_s18  ;;  %812 = vrot.lane.b32.xlu0 %v2485_v13, %s2267_s20  ;;  %s2709_s20 = scalar_lea.vmem %s2666_s7, %s2399_s28 }
 0x112   : > { %925 = vrot.lane.b32.xlu0 %v2485_v13, %s2268_s0 }
 0x180   : > { %v813_v15 = vpop.permute.xlu0 %812  ;;  %v924_v19 = vpop.permute.xlu1 %923 }
 0x181   : > { %v819_v16 = vsel %vm814_vm3, %v813_v15, 0 }
 0x182   : > { %2035 = vmatpush3.bf16.xpose.msra.mxu1 %v819_v16 }
 0x183   : > { %2046 = vmatprep.subr.bf16.mxu1 %v2264_v4 }
 0x184   : > { %v926_v17 = vpop.permute.xlu0 %925 }
 0x185   : > { %v931_v18 = vsel %vm814_vm3, %v926_v17, 0 }
 0x189   : > { %2037 = vmatmul.mubr.msk.bf16.vlgmr.msra.gmra.mrb[4].mxu1 %vm814_vm3, %v2485_v13 }
 0x18a   : > { %2047 = vmatpush3.bf16.xpose.msra.mxu1 %v931_v18  ;;  %2048 = vmatprep.mubr.msk.bf16.mxu1 %vm2265_vm1, %v2264_v4 }
 0x18b   : > { %2058 = vmatprep.subr.bf16.mxu1 %v2264_v4 }
 0x191   : > { %2049 = vmatmul.mubr.msk.bf16.vlgmr.msra.gmra.mrb[8].mxu1 %vm814_vm3, %v924_v19 }
 0x192   : > { %2060 = vmatprep.mubr.msk.bf16.mxu1 %vm2265_vm1, %v2264_v4  ;;  %2059 = vmatpush3.bf16.msra.mxu1 %v1038_v62 }
 0x193   : > { %2070 = vmatprep.subr.bf16.mxu1 %v2264_v4 }
 0x25c   : > { %v855_v25 = vpop.f32.mrb[4].mxu1 }
 0x25d   : > { %v856_v26 = vadd.f32 %v855_v25, %v2501_v24  ;;  %v2038_v27 = vpop.f32.mrb[5].mxu1 }
 0x25e   : > { %v858_v28 = vpop.f32.mrb[6].mxu1 }
 0x25f   : > { %v2039_v29 = vpop.f32.mrb[7].mxu1  ;;  %v861_v30 = vsel %vm814_vm3, %v856_v26, -inf }
 0x260   : > { %862 = vmax.xlane.f32.xlu1 %v861_v30 }
 0x264   : > { %v967_v31 = vpop.f32.mrb[8].mxu1 }
 0x265   : > { %v968_v32 = vadd.f32 %v967_v31, %v2501_v24  ;;  %v2050_v33 = vpop.f32.mrb[9].mxu1 }
 0x266   : > { %v970_v34 = vpop.f32.mrb[10].mxu1 }
 0x267   : > { %v2051_v35 = vpop.f32.mrb[11].mxu1  ;;  %v973_v36 = vsel %vm814_vm3, %v968_v32, -inf }
 0x268   : > { %974 = vmax.xlane.f32.xlu0 %v973_v36 }
 0x2ed   : > { %v863_v37 = vpop.xlane.xlu1 %862 }
 0x2ee   : > { %v864_v38 = vsub.f32 %v856_v26, %v863_v37 }
 0x2f0   : > { %v865_v39 = vmul.f32 1.442695, %v864_v38 }
 0x2f2   : > { %2198 = vpow2.f32 %v865_v39 }
 0x2f5   : > { %v975_v40 = vpop.xlane.xlu0 %974 }
 0x2f6   : > { %v976_v41 = vsub.f32 %v968_v32, %v975_v40 }
 0x2f8   : > { %v977_v42 = vmul.f32 1.442695, %v976_v41 }
 0x2fa   : > { %2200 = vpow2.f32 %v977_v42 }
 0x2fc   : > { %v2199_v43 = vpop.eup %2198 }
 0x2fd   : > { %v867_v44 = vsel %vm814_vm3, %v2199_v43, 0.0 }
 0x2fe   : > { %868 = vadd.xlane.f32.xlu0 %v867_v44 }
 0x304   : > { %v2201_v45 = vpop.eup %2200 }
 0x305   : > { %v979_v46 = vsel %vm814_vm3, %v2201_v45, 0.0 }
 0x306   : > { %980 = vadd.xlane.f32.xlu1 %v979_v46 }
 0x314   : > { %873 = vrot.lane.b32.xlu0 %v2485_v13, %s2270_s13 }
 0x317   : > { %985 = vrot.lane.b32.xlu1 %v2485_v13, %s2271_s27  ;;  %s2710_s27 = sld [smem:[#allocation14_spill]] }
 0x318   : > { %1126 = vrot.lane.b32.xlu0 %v2485_v13, %s2272_s19 }
 0x31b   : > { %1128 = vrot.lane.b32.xlu1 %v2485_v13, %s2273_s23 }
 0x31d   : > { %s2711_s19 = scalar_lea.vmem %s2710_s27, %s2399_s28 }
 0x38b   : > { %v869_v47 = vpop.xlane.xlu0 %868 }
 0x38c   : > { %2202 = vrcp.f32 %v869_v47 }
 0x38f   : > { %v874_v48 = vpop.permute.xlu0 %873 }
 0x390   : > { %v880_v49 = vsel %vm878_vm5, %v874_v48, 0 }
 0x391   : > { %2041 = vmatpush3.bf16.msra.mxu0 %v880_v49 }
 0x392   : > { %2052 = vmatprep.subr.bf16.mxu0 %v2264_v4 }
 0x393   : > { %v981_v50 = vpop.xlane.xlu1 %980  ;;  %v1127_v14 = vpop.permute.xlu0 %1126 }
 0x394   : > { %2204 = vrcp.f32 %v981_v50 }
 0x396   : > { %v2203_v51 = vpop.eup %2202 }
 0x397   : > { %v871_v52 = vmul.f32 %v2203_v51, %v2199_v43  ;;  %v986_v53 = vpop.permute.xlu1 %985 }
 0x398   : > { %v991_v55 = vsel %vm878_vm5, %v986_v53, 0 }
 0x399   : > { %v872_v54 = vpack.c.bf16 %v871_v52, %v871_v52 }
 0x39b   : > { %2043 = vmatmul.mubr.msk.bf16.vlgmr.msra.gmra.mrb[0].mxu0 %vm814_vm3, %v872_v54  ;;  %v1129_v5 = vpop.permute.xlu1 %1128 }
 0x39c   : > { %2053 = vmatpush3.bf16.msra.mxu0 %v991_v55  ;;  %2054 = vmatprep.mubr.msk.bf16.mxu0 %vm2265_vm1, %v2264_v4  ;;  %v1134_v11 = vsel %vm814_vm3, %v1129_v5, 0 }
 0x39d   : > { %2064 = vmatprep.subr.bf16.mxu0 %v2264_v4 }
 0x39e   : > { %v2205_v56 = vpop.eup %2204 }
 0x39f   : > { %v983_v57 = vmul.f32 %v2205_v56, %v2201_v45  ;;  %v808_v45 = vld [vmem:[%s2415_s1 + $0x8] sm:$0xf] }
 0x3a0   : > { %v1241_v46 = vsel %vm878_vm5, %v808_v45, 0 }
 0x3a1   : > { %v984_v58 = vpack.c.bf16 %v983_v57, %v983_v57 }
 0x3a3   : > { %2055 = vmatmul.mubr.msk.bf16.vlgmr.msra.gmra.mrb[4].mxu0 %vm814_vm3, %v984_v58 }
 0x3a4   : > { %2066 = vmatprep.mubr.msk.bf16.mxu0 %vm2265_vm1, %v2264_v4  ;;  %2065 = vmatpush3.bf16.msra.mxu0 %v1084_v60 }
 0x3a5   : > { %2076 = vmatprep.subr.bf16.mxu0 %v2264_v4 }
 0x46e   : > { %v916_v63 = vpop.f32.mrb[0].mxu0 }
 0x46f   : > { %v922_v0 = vpack.c.bf16 %v916_v63, %v916_v63  ;;  %v2044_v1 = vpop.f32.mrb[1].mxu0 }
 0x470   : > { %v919_v2 = vpop.f32.mrb[2].mxu0 }
 0x471   : > { %v2045_v3 = vpop.f32.mrb[3].mxu0  ;;  %2067 = vmatmul.mubr.msk.bf16.vlgmr.msra.gmra.mrb[8].mxu0 %vm814_vm3, %v922_v0  ;;  %v809_v0 = vld [vmem:[%s2415_s1 + $0xc] sm:$0xf]  ;;  %s2713_s1 = sld [smem:[#allocation3_spill]] }
 0x472   : > { %2078 = vmatprep.mubr.msk.bf16.mxu0 %vm2265_vm1, %v2264_v4  ;;  %v1399_v1 = vsel %vm878_vm5, %v809_v0, 0 }
 0x476   : > { %v1027_v7 = vpop.f32.mrb[4].mxu0 }
 0x477   : > { %v1033_v8 = vpack.c.bf16 %v1027_v7, %v1027_v7  ;;  %v2056_v9 = vpop.f32.mrb[5].mxu0  ;;  %p1977_p8 = scmp.ne.s32.totalorder %s2713_s1, 1 }
 0x478   : > { %v1030_v10 = vpop.f32.mrb[6].mxu0  ;;  %vm2279_vm7 = vmmov (!%p1977_p8), 0   ;;  %s2716_s29 = sld [smem:[#allocation17_spill]] (!%p1977_p8) }
 0x479   : > { %v2057_v12 = vpop.f32.mrb[7].mxu0  ;;  %2061 = vmatmul.mubr.msk.bf16.vlgmr.msra.gmra.mrb[12].mxu1 %vm814_vm3, %v1033_v8 }
 0x47a   : > { %2071 = vmatpush3.bf16.xpose.msra.mxu1 %v1134_v11  ;;  %2072 = vmatprep.mubr.msk.bf16.mxu1 %vm2265_vm1, %v2264_v4 }
 0x47b   : > { %2082 = vmatprep.subr.bf16.mxu1 %v2264_v4 }
 0x481   : > { %2073 = vmatmul.mubr.msk.bf16.vlgmr.msra.gmra.mrb[16].mxu1 %vm814_vm3, %v1127_v14 }
 0x482   : > { %2084 = vmatprep.mubr.msk.bf16.mxu1 %vm2265_vm1, %v2264_v4  ;;  %2083 = vmatpush3.bf16.msra.mxu1 %v1241_v46  ;;  %v2196_v46 = vld [vmem:[%s2446_s17 + $0x10] sm:$0xff]  }
 0x483   : > { %2094 = vmatprep.subr.bf16.mxu1 %v2264_v4 }
 0x544   : > { %v1120_v15 = vpop.f32.mrb[8].mxu0 }
 0x545   : > { %v2068_v16 = vpop.f32.mrb[9].mxu0 }
 0x546   : > { %v1123_v17 = vpop.f32.mrb[10].mxu0 }
 0x547   : > { %v2069_v18 = vpop.f32.mrb[11].mxu0 }
 0x54c   : > { %v1074_v19 = vpop.f32.mrb[12].mxu1 }
 0x54d   : > { %v2540_v20 = vadd.f32 %v1120_v15, %v1074_v19  ;;  %v2062_v21 = vpop.f32.mrb[13].mxu1  ;;  %v1962_v19 = vld [vmem:[%s2707_s30] ss:$0 sm:$0xff] }
 0x54e   : > { %v1077_v22 = vpop.f32.mrb[14].mxu1 }
 0x54f   : > { %v2063_v23 = vpop.f32.mrb[15].mxu1 }
 0x554   : > { %v1170_v25 = vpop.f32.mrb[16].mxu1 }
 0x555   : > { %v1171_v26 = vadd.f32 %v1170_v25, %v2501_v24  ;;  %v2074_v27 = vpop.f32.mrb[17].mxu1 }
 0x556   : > { %v1173_v28 = vpop.f32.mrb[18].mxu1 }
 0x557   : > { %v2075_v29 = vpop.f32.mrb[19].mxu1  ;;  %v1176_v30 = vsel %vm814_vm3, %v1171_v26, -inf }
 0x558   : > { %1177 = vmax.xlane.f32.xlu1 %v1176_v30 }
 0x569   : > { %1286 = vrot.lane.b32.xlu1 %v2485_v13, %s2274_s14 }
 0x56d   : > { %1284 = vrot.lane.b32.xlu1 %v2485_v13, %s2275_s15 }
 0x5e5   : > { %v1178_v31 = vpop.xlane.xlu1 %1177 }
 0x5e6   : > { %v1179_v32 = vsub.f32 %v1171_v26, %v1178_v31 }
 0x5e8   : > { %v1180_v33 = vmul.f32 1.442695, %v1179_v32 }
 0x5e9   : > { %v1287_v41 = vpop.permute.xlu1 %1286 }
 0x5ea   : > { %2206 = vpow2.f32 %v1180_v33  ;;  %v1292_v43 = vsel %vm814_vm3, %v1287_v41, 0  ;;  %v2192_v33 = vld [vmem:[%s2432_s24] sm:$0xff]  }
 0x5ed   : > { %v1285_v44 = vpop.permute.xlu1 %1284 }
 0x5f4   : > { %v2207_v34 = vpop.eup %2206 }
 0x5f5   : > { %v1182_v35 = vsel %vm814_vm3, %v2207_v34, 0.0 }
 0x5f6   : > { %1183 = vadd.xlane.f32.xlu0 %v1182_v35  ;;  %v2195_v35 = vld [vmem:[%s2446_s17 + $0x8] sm:$0xff]  }
 0x60c   : > { %1188 = vrot.lane.b32.xlu0 %v2485_v13, %s2276_s21 }
 0x683   : > { %v1184_v36 = vpop.xlane.xlu0 %1183 }
 0x684   : > { %2208 = vrcp.f32 %v1184_v36 }
 0x687   : > { %v1189_v37 = vpop.permute.xlu0 %1188 }
 0x688   : > { %v1194_v38 = vsel %vm878_vm5, %v1189_v37, 0 }
 0x689   : > { %2077 = vmatpush3.bf16.msra.mxu0 %v1194_v38 }
 0x68a   : > { %2088 = vmatprep.subr.bf16.mxu0 %v2264_v4 }
 0x68e   : > { %v2209_v39 = vpop.eup %2208 }
 0x68f   : > { %v1186_v40 = vmul.f32 %v2209_v39, %v2207_v34  ;;  %v2193_v34 = vld [vmem:[%s2432_s24 + $0x8] sm:$0xff]   ;;  %s2714_s24 = sld [smem:[#allocation16_spill]] (!%p1977_p8) }
 0x691   : > { %v1187_v42 = vpack.c.bf16 %v1186_v40, %v1186_v40  ;;  %v1963_v40 = vld [vmem:[%s2708_s26] ss:$0 sm:$0xff] }
 0x693   : > { %2079 = vmatmul.mubr.msk.bf16.vlgmr.msra.gmra.mrb[12].mxu0 %vm814_vm3, %v1187_v42  ;;  %v1964_v42 = vld [vmem:[%s2709_s20] ss:$0 sm:$0xff] }
 0x694   : > { %2089 = vmatpush3.bf16.xpose.msra.mxu0 %v1292_v43  ;;  %2090 = vmatprep.mubr.msk.bf16.mxu0 %vm2265_vm1, %v2264_v4 }
 0x695   : > { %2100 = vmatprep.subr.bf16.mxu0 %v2264_v4  ;;  %s2715_s26 = smov (!%p1977_p8), %s2714_s24 }
 0x69b   : > { %2091 = vmatmul.mubr.msk.bf16.vlgmr.msra.gmra.mrb[16].mxu0 %vm814_vm3, %v1285_v44 }
 0x69c   : > { %2102 = vmatprep.mubr.msk.bf16.mxu0 %vm2265_vm1, %v2264_v4  ;;  %2101 = vmatpush3.bf16.msra.mxu0 %v1399_v1 }
 0x69d   : > { %2114 = vmatprep.subr.bf16.mxu0 %v2264_v4 }
 0x766   : > { %v1230_v47 = vpop.f32.mrb[12].mxu0 }
 0x767   : > { %v1236_v48 = vpack.c.bf16 %v1230_v47, %v1230_v47  ;;  %v2080_v49 = vpop.f32.mrb[13].mxu0  ;;  %v2197_v47 = vld [vmem:[%s2446_s17 + $0x18] sm:$0xff]  }
 0x768   : > { %v1233_v50 = vpop.f32.mrb[14].mxu0 }
 0x769   : > { %v2081_v51 = vpop.f32.mrb[15].mxu0  ;;  %2085 = vmatmul.mubr.msk.bf16.vlgmr.msra.gmra.mrb[20].mxu1 %vm814_vm3, %v1236_v48  ;;  %v1965_v48 = vld [vmem:[%s2711_s19] ss:$0 sm:$0xff] }
 0x76a   : > { %2096 = vmatprep.mubr.msk.bf16.mxu1 %vm2265_vm1, %v2264_v4 }
 0x76e   : > { %v1328_v52 = vpop.f32.mrb[16].mxu0 }
 0x76f   : > { %v1329_v53 = vadd.f32 %v1328_v52, %v2501_v24  ;;  %v2092_v54 = vpop.f32.mrb[17].mxu0 }
 0x770   : > { %v1331_v55 = vpop.f32.mrb[18].mxu0 }
 0x771   : > { %v2093_v56 = vpop.f32.mrb[19].mxu0  ;;  %v1334_v57 = vsel %vm814_vm3, %v1329_v53, -inf }
 0x772   : > { %1335 = vmax.xlane.f32.xlu0 %v1334_v57 }
 0x788   : > { %1346 = vrot.lane.b32.xlu0 %v2485_v13, %s2277_s22 }
 0x7ff   : > { %v1336_v58 = vpop.xlane.xlu0 %1335 }
 0x800   : > { %v1337_v59 = vsub.f32 %v1329_v53, %v1336_v58 }
 0x802   : > { %v1338_v60 = vmul.f32 1.442695, %v1337_v59 }
 0x803   : > { %v1347_v61 = vpop.permute.xlu0 %1346 }
 0x804   : > { %2210 = vpow2.f32 %v1338_v60  ;;  %v1352_v62 = vsel %vm878_vm5, %v1347_v61, 0 }
 0x805   : > { %2095 = vmatpush3.bf16.msra.mxu1 %v1352_v62 }
 0x806   : > { %2106 = vmatprep.subr.bf16.mxu1 %v2264_v4 }
 0x80e   : > { %v2211_v24 = vpop.eup %2210 }
 0x80f   : > { %v1340_v63 = vsel %vm814_vm3, %v2211_v24, 0.0 }
 0x810   : > { %1341 = vadd.xlane.f32.xlu1 %v1340_v63 }
 0x83c   : > { %v1277_v13 = vpop.f32.mrb[20].mxu1 }
 0x83d   : > { %v1283_v2 = vadd.f32 %v1277_v13, %v2540_v20  ;;  %v2086_v3 = vpop.f32.mrb[21].mxu1 }
 0x83e   : > { %v1280_v5 = vpop.f32.mrb[22].mxu1 }
 0x83f   : > { %v2087_v7 = vpop.f32.mrb[23].mxu1 }
 0x89d   : > { %v1342_v8 = vpop.xlane.xlu1 %1341 }
 0x89e   : > { %2212 = vrcp.f32 %v1342_v8  ;;  %v1975_v8 = vld [vmem:[%s713_s2] ss:$0 sm:$0xff] }
 0x8a8   : > { %v2213_v9 = vpop.eup %2212 }
 0x8a9   : > { %v1344_v10 = vmul.f32 %v2213_v9, %v2211_v24 }
 0x8ab   : > { %v1345_v11 = vpack.c.bf16 %v1344_v10, %v1344_v10  ;;  %v1976_v10 = vld [vmem:[%s716_s8] ss:$0 sm:$0xff] }
 0x8ad   : > { %2097 = vmatmul.mubr.msk.bf16.vlgmr.msra.gmra.mrb[24].mxu1 %vm814_vm3, %v1345_v11 }
 0x8ae   : > { %2110 = vmatprep.mubr.msk.bf16.mxu1 %vm2265_vm1, %v2264_v4  ;;  %2107 = vmatpush3.bf16.msra.mxu1 %v2192_v33 }
 0x8af   : > { %2108 = vmatprep.subr.bf16.mxu1 %v2264_v4 }
 0x8b2   : > { %2109 = vmatpush3.bf16.msra.mxu1 %v2193_v34 }
 0x980   : > { %v1388_v12 = vpop.f32.mrb[24].mxu1 }
 0x981   : > { %v1394_v14 = vpack.c.bf16 %v1388_v12, %v1388_v12  ;;  %v2098_v15 = vpop.f32.mrb[25].mxu1 }
 0x982   : > { %v1391_v16 = vpop.f32.mrb[26].mxu1  ;;  %v2278_v15 = vmov (!%p1977_p8), 0.0  }
 0x983   : > { %v2099_v17 = vpop.f32.mrb[27].mxu1  ;;  %2103 = vmatmul.mubr.msk.bf16.vlgmr.msra.gmra.mrb[20].mxu0 %vm814_vm3, %v1394_v14  ;;  %v2218_v14 = vld [vmem:[%s2714_s24] sm:$0xff] (!%p1977_p8)   ;;  %v2219_v16 = vld [vmem:[%s2715_s26 + $0x8] sm:$0xff] (!%p1977_p8)  }
 0x984   : > { %2122 = vmatprep.mubr.msk.bf16.mxu0 %vm2265_vm1, %v2264_v4 }
 0xa56   : > { %v1435_v18 = vpop.f32.mrb[20].mxu0 }
 0xa57   : > { %v1441_v20 = vadd.f32 %v1435_v18, %v1283_v2  ;;  %v2104_v21 = vpop.f32.mrb[21].mxu0  ;;  %v1978_v18 = vld [vmem:[%s2716_s29] ss:$0 sm:$0xff] (!%p1977_p8) }
 0xa58   : > { %v1438_v22 = vpop.f32.mrb[22].mxu0 }
 0xa59   : > { %v1449_v23 = vadd.f32 %v1962_v19, %v1441_v20  ;;  %v2105_v25 = vpop.f32.mrb[23].mxu0 }
 0xa5b   : > { %v1450_v26 = vadd.f32 %v1449_v23, %v2469_v6  ;;  %v2194_v6 = vld [vmem:[%s2446_s17] sm:$0xff]  }
 0xa5c   : > { %2115 = vmatpush3.bf16.msra.mxu0 %v2194_v6 }
 0xa5d   : > { %v1453_v27 = vsel %vm756_vm2, %v1450_v26, 0.0  ;;  %2116 = vmatprep.subr.bf16.mxu0 %v2264_v4 }
 0xa5e   : > { %1454 = vadd.xlane.f32.xlu1 %v1453_v27 }
 0xa60   : > { %2117 = vmatpush3.bf16.msra.mxu0 %v2195_v35 }
 0xa61   : > { %2118 = vmatprep.subr.bf16.mxu0 %v2264_v4 }
 0xa64   : > { %2119 = vmatpush3.bf16.msra.mxu0 %v2196_v46 }
 0xa65   : > { %2120 = vmatprep.subr.bf16.mxu0 %v2264_v4  ;;  %v1969_v4 = vld [vmem:[%s710_s16] ss:$0 sm:$0xff] }
 0xa68   : > { %2121 = vmatpush3.bf16.msra.mxu0 %v2197_v47 }
 0xa69   : > { %2126 = vmatprep.subr.bf16.mxu0 (!%p1977_p8), %v2278_v15 }
 0xaeb   : > { %v1455_v28 = vpop.xlane.xlu1 %1454 }
 0xaec   : > { %v1457_v29 = vmul.f32 0.03125, %v1455_v28 }
 0xaee   : > { %v1458_v30 = vsub.f32 %v1450_v26, %v1457_v29 }
 0xaf0   : > { %v1459_v31 = vmul.f32 %v1458_v30, %v1458_v30 }
 0xaf2   : > { %v1460_v32 = vsel %vm756_vm2, %v1459_v31, 0.0 }
 0xaf3   : > { %1461 = vadd.xlane.f32.xlu1 %v1460_v32 }
 0xb80   : > { %v1462_v36 = vpop.xlane.xlu1 %1461 }
 0xb81   : > { %v1463_v37 = vmul.f32 0.03125, %v1462_v36 }
 0xb83   : > { %v1464_v38 = vadd.f32 1e-05, %v1463_v37 }
 0xb85   : > { %2214 = vrsqrt.f32 %v1464_v38 }
 0xb8f   : > { %v2215_v39 = vpop.eup %2214 }
 0xb90   : > { %v1466_v41 = vmul.f32 %v2215_v39, %v1458_v30 }
 0xb92   : > { %v1473_v43 = vmul.f32 %v1963_v40, %v1466_v41 }
 0xb94   : > { %v1480_v44 = vadd.f32 %v1964_v42, %v1473_v43 }
 0xb96   : > { %v1481_v45 = vpack.c.bf16 %v1480_v44, %v1480_v44 }
 0xb98   : > { %2111 = vmatmul.mubr.msk.bf16.vlgmr.msra.gmra.mrb[28].mxu1 %vm756_vm2, %v1481_v45 }
 0xc6b   : > { %v1542_v49 = vpop.f32.mrb[28].mxu1 }
 0xc6c   : > { %v1543_v50 = vadd.f32 %v1965_v48, %v1542_v49  ;;  %v2112_v51 = vpop.f32.mrb[29].mxu1 }
 0xc6d   : > { %v1545_v52 = vpop.f32.mrb[30].mxu1 }
 0xc6e   : > { %v1548_v53 = vmax.f32 %v1543_v50, 0.0  ;;  %v2113_v54 = vpop.f32.mrb[31].mxu1 }
 0xc70   : > { %v1549_v55 = vpack.c.bf16 %v1548_v53, %v1548_v53 }
 0xc72   : > { %2123 = vmatmul.mubr.msk.bf16.vlgmr.msra.gmra.mrb[24].mxu0 %vm1589_vm6, %v1549_v55 }
 0xc73   : > { %2127 = vmatpush3.bf16.msra.mxu0 (!%p1977_p8), %v2218_v14  ;;  %2130 = vmatprep.mubr.msk.bf16.mxu0 (!%p1977_p8), %vm2279_vm7, %v2278_v15 }
 0xc74   : > { %2128 = vmatprep.subr.bf16.mxu0 (!%p1977_p8), %v2278_v15 }
 0xc77   : > { %2129 = vmatpush3.bf16.msra.mxu0 (!%p1977_p8), %v2219_v16 }
 0xd45   : > { %v1627_v56 = vpop.f32.mrb[24].mxu0 }
 0xd46   : > { %v1628_v57 = vadd.f32 %v1969_v4, %v1627_v56  ;;  %v2124_v58 = vpop.f32.mrb[25].mxu0 }
 0xd47   : > { %v1630_v59 = vpop.f32.mrb[26].mxu0 }
 0xd48   : > { %v2125_v60 = vpop.f32.mrb[27].mxu0  ;;  %v1633_v61 = vadd.f32 %v1628_v57, %v1480_v44 }
 0xd4a   : > { %v1636_v62 = vsel %vm756_vm2, %v1633_v61, 0.0 }
 0xd4b   : > { %1637 = vadd.xlane.f32.xlu1 %v1636_v62 }
 0xdd8   : > { %v1638_v24 = vpop.xlane.xlu1 %1637 }
 0xdd9   : > { %v1639_v63 = vmul.f32 0.03125, %v1638_v24 }
 0xddb   : > { %v1640_v0 = vsub.f32 %v1633_v61, %v1639_v63 }
 0xddd   : > { %v1641_v1 = vmul.f32 %v1640_v0, %v1640_v0 }
 0xddf   : > { %v1642_v13 = vsel %vm756_vm2, %v1641_v1, 0.0 }
 0xde0   : > { %1643 = vadd.xlane.f32.xlu1 %v1642_v13 }
 0xe6d   : > { %v1644_v2 = vpop.xlane.xlu1 %1643 }
 0xe6e   : > { %v1645_v3 = vmul.f32 0.03125, %v1644_v2 }
 0xe70   : > { %v1646_v5 = vadd.f32 1e-05, %v1645_v3 }
 0xe72   : > { %2216 = vrsqrt.f32 %v1646_v5 }
 0xe7c   : > { %v2217_v7 = vpop.eup %2216 }
 0xe7d   : > { %v1648_v9 = vmul.f32 %v2217_v7, %v1640_v0  ;;  %1667 = sbr.rel (%p1977_p8) target bundleno = 4246 (0x1096), region = 92 }
 0xe7f   : > { %v1655_v11 = vmul.f32 %v1975_v8, %v1648_v9 }
 0xe81   : > { %v1662_v12 = vadd.f32 %v1976_v10, %v1655_v11 }
 0xe83   : > { %1663 = vst.msk [vmem:[#allocation2] sm:$0xff] %vm756_vm2, %v1662_v12  ;;  %v1668_v17 = vpack.c.bf16 (!%p1977_p8), %v1662_v12, %v1662_v12 }
 0xe85   : > { %2131 = vmatmul.mubr.msk.bf16.vlgmr.msra.gmra.mrb[0].mxu0 %vm756_vm2, %v1668_v17 }
 0xf58   : > { %v1729_v19 = vpop.f32.mrb[0].mxu0 }
 0xf59   : > { %v1730_v20 = vadd.f32 %v1978_v18, %v1729_v19  ;;  %v2132_v21 = vpop.f32.mrb[1].mxu0 }
 0xf5a   : > { %v1732_v22 = vpop.f32.mrb[2].mxu0 }
 0xf5b   : > { %1735 = vmax.xlane.f32.xlu0 %v1730_v20  ;;  %v2133_v23 = vpop.f32.mrb[3].mxu0 }
 0xfe8   : > { %v1736_v25 = vpop.xlane.xlu0 %1735 }
 0xfe9   : > { %v1737_v26 = vsub.f32 %v1730_v20, %v1736_v25 }
 0xfeb   : > { %v1738_v27 = vmul.f32 1.442695, %v1737_v26 }
 0xfed   : > { %2220 = vpow2.f32 %v1738_v27 }
 0xff7   : > { %v2221_v28 = vpop.eup %2220 }
 0xff8   : > { %1740 = vadd.xlane.f32.xlu0 %v2221_v28 }
0x1085   : > { %v1741_v29 = vpop.xlane.xlu0 %1740 }
0x1086   : > { %2222 = vlog2.f32 %v1741_v29 }
0x1090   : > { %v2223_v30 = vpop.eup %2222 }
0x1091   : > { %v1743_v31 = vmul.f32 0.6931472, %v2223_v30 }
0x1093   : > { %v1744_v32 = vsub.f32 %v1737_v26, %v1743_v31 }
0x1095   : > { %1745 = vst [vmem:[%s2459_s9] sm:$0xff] %v1744_v32 }
0x1096 PF: > { %s2717_s18 = sld [smem:[#allocation6_spill]]  ;;  %s2718_s21 = sld [smem:[#allocation4_spill]] }
0x1097   : > { %s2719_s22 = sld [smem:[#allocation5_spill]]  ;;  %s2720_s23 = sld [smem:[#allocation7_spill]] }
0x1098   : > { %s2721_s24 = sld [smem:[#allocation8_spill]] }
0x109c   : > { %s26_s25 = sadd.s32 1, %s2717_s18  }
0x109d   : > { %p23_p9 = scmp.ge.s32.totalorder %s26_s25, 6  }
0x109f   :  { %25 = sbr.rel (!%p23_p9) target bundleno = 11 (0xb), region = 158 }

</bundles_post_ra>
